<compile_context>
chip_gen: v7x
topology: tpu7x:2x2x1
jax: 0.10.0
libtpu: 0.0.40
codegen_flags: <defaults>
</compile_context>

<pallas_src>
import functools

import jax
import jax.numpy as jnp
from jax.experimental import pallas as pl
from jax.experimental.pallas import tpu as pltpu


# ----------------------------------------------------------------------------
# Shared in-kernel math for the single-eval kernel: time-index lookup +
# gather + 4-layer MLP (exact ODEFunc.forward semantics).
# ----------------------------------------------------------------------------
def _ode_mlp(t, x, tt, cur, w1, b1, w2, b2, w3, b3, w4r, b4):
    """t: f32 scalar; x: (B,1); tt: (1,S); cur: (B,S); returns (B,1)."""
    B, S = cur.shape

    # time_idx = argmin |time_tensor - t| with torch/jnp tie-breaking
    # (first index attaining the minimum): min-value then min-index-of-min.
    d = jnp.abs(tt - t)                                          # (1, S)
    d_min = jnp.min(d, axis=-1, keepdims=True)                   # (1, 1)
    lane_s = jax.lax.broadcasted_iota(jnp.int32, (1, S), 1)      # (1, S)
    idx = jnp.min(jnp.where(d == d_min, lane_s, S),
                  axis=-1, keepdims=True)                        # (1, 1) int32

    # current_at_t = current_profile[:, idx] via masked lane-reduce.
    lane_bs = jax.lax.broadcasted_iota(jnp.int32, (B, S), 1)
    cur_t = jnp.sum(jnp.where(lane_bs == idx, cur, 0.0),
                    axis=-1, keepdims=True)                      # (B, 1)

    # Layer 1 (3 -> 128): rank-1 broadcasts instead of a K=3 matmul + concat.
    h = x * w1[0:1, :] + cur_t * w1[1:2, :] + t * w1[2:3, :] + b1
    h = jnp.maximum(h, 0.0)

    # Layers 2/3 (128 -> 128 -> 64): MXU matmuls with f32 accumulation.
    h = jnp.maximum(jnp.dot(h, w2, preferred_element_type=jnp.float32) + b2, 0.0)
    h = jnp.maximum(jnp.dot(h, w3, preferred_element_type=jnp.float32) + b3, 0.0)

    # Layer 4 (64 -> 1): VPU multiply + lane reduce.
    return jnp.sum(h * w4r, axis=-1, keepdims=True) + b4         # (B, 1)


# ----------------------------------------------------------------------------
# Kernel 1: single evaluation of ODEFunc.forward (exact module semantics)
# ----------------------------------------------------------------------------
def _odefunc_forward_kernel(t_ref, tt_ref, cur_ref, x_ref,
                            w1_ref, b1_ref, w2_ref, b2_ref,
                            w3_ref, b3_ref, w4r_ref, b4_ref,
                            out_ref):
    t = t_ref[0, 0]
    out_ref[...] = _ode_mlp(
        t, x_ref[...], tt_ref[...], cur_ref[...],
        w1_ref[...], b1_ref[...], w2_ref[...], b2_ref[...],
        w3_ref[...], b3_ref[...], w4r_ref[...], b4_ref[...])


def _flat_params(params):
    # w4 is reshaped to (1, 64) so layer 4 can be a lane-oriented VPU reduce.
    w4r = jnp.reshape(params["w4"].astype(jnp.float32), (1, -1))
    return (params["w1"], params["b1"],
            params["w2"], params["b2"],
            params["w3"], params["b3"],
            w4r, params["b4"])


def odefunc_forward(t, x, current_profile, time_tensor, params):
    """Single ODEFunc.forward(t, x) evaluation (one fused pallas_call).

    NOTE: avoid driving an external solver loop with this entry point — each
    call re-DMAs all weights from HBM; use odefunc_integrate_euler instead.
    """
    if time_tensor.ndim != 1:
        raise ValueError(f"Expected time_tensor to be 1D, got {time_tensor.shape}")
    B, S, _ = current_profile.shape

    t_arr = jnp.reshape(t, (1, 1)).astype(jnp.float32)
    tt = jnp.reshape(time_tensor.astype(jnp.float32), (1, S))
    cur = jnp.reshape(current_profile.astype(jnp.float32), (B, S))
    flat = _flat_params(params)

    vmem = pl.BlockSpec(memory_space=pltpu.MemorySpace.VMEM)
    smem = pl.BlockSpec(memory_space=pltpu.MemorySpace.SMEM)
    in_specs = [smem, vmem, vmem, vmem] + [vmem] * len(flat)

    return pl.pallas_call(
        _odefunc_forward_kernel,
        out_shape=jax.ShapeDtypeStruct((B, 1), jnp.float32),
        in_specs=in_specs,
        out_specs=vmem,
    )(t_arr, tt, cur, x.astype(jnp.float32), *flat)


# ----------------------------------------------------------------------------
# Kernel 2: fused explicit-Euler rollout — whole solver loop as ONE un-gridded
# pallas_call with an in-kernel unrolled fori_loop and vreg-carried state.
# ----------------------------------------------------------------------------
def _odefunc_euler_kernel(ts_ref,        # (n_steps+1,) f32, SMEM
                          idx_ref,       # (n_steps,)   i32, SMEM (precomputed argmin)
                          cur_ref, x0_ref,
                          w1_ref, b1_ref, w2_ref, b2_ref,
                          w3_ref, b3_ref, w4r_ref, b4_ref,
                          traj_ref,      # (B, n_cols) lane-dense output slab
                          *, n_steps, unroll):
    B, S = cur_ref.shape
    n_cols = traj_ref.shape[1]

    # Load all VMEM operands once; they stay vreg/VMEM resident for the loop.
    cur = cur_ref[...]
    w1 = w1_ref[...]
    w1_x, w1_c, w1_t = w1[0:1, :], w1[1:2, :], w1[2:3, :]        # hoisted slices
    b1 = b1_ref[...]
    w2 = w2_ref[...]; b2 = b2_ref[...]
    w3 = w3_ref[...]; b3 = b3_ref[...]
    w4r = w4r_ref[...]; b4 = b4_ref[...]

    # Loop-invariant iotas hoisted out of the step body (JAX doesn't CSE them).
    lane_bs = jax.lax.broadcasted_iota(jnp.int32, (B, S), 1)      # profile gather
    lane_tr = jax.lax.broadcasted_iota(jnp.int32, (B, n_cols), 1)  # traj scatter

    def step(s, carry):
        x, traj = carry
        t = ts_ref[s]
        dt = ts_ref[s + 1] - t
        idx = idx_ref[s]

        # current_profile[:, idx] via masked lane-reduce (in-kernel gather).
        cur_t = jnp.sum(jnp.where(lane_bs == idx, cur, 0.0),
                        axis=-1, keepdims=True)                   # (B, 1)

        # Layer 1 (3 -> 128): rank-1 broadcasts; Layers 2/3: MXU; Layer 4: VPU.
        h = jnp.maximum(x * w1_x + cur_t * w1_c + t * w1_t + b1, 0.0)
        h = jnp.maximum(jnp.dot(h, w2, preferred_element_type=jnp.float32) + b2, 0.0)
        h = jnp.maximum(jnp.dot(h, w3, preferred_element_type=jnp.float32) + b3, 0.0)
        dx = jnp.sum(h * w4r, axis=-1, keepdims=True) + b4        # (B, 1)

        x_new = x + dt * dx
        # Scatter x_{s+1} into column s of the vreg-resident slab (VPU select).
        traj = jnp.where(lane_tr == s, x_new, traj)
        return x_new, traj

    x0 = x0_ref[...]
    traj0 = jnp.zeros((B, n_cols), jnp.float32)
    _, traj = jax.lax.fori_loop(0, n_steps, step, (x0, traj0), unroll=unroll)

    # Single full-lane, unmasked writeback at the very end.
    traj_ref[...] = traj


def odefunc_integrate_euler(ts, x0, current_profile, time_tensor, params,
                            *, unroll=8):
    """Fused explicit-Euler rollout of dx/dt = ODEFunc(t, x).

    ts: (n_steps+1,) evaluation times; x0: (B, 1) initial state.
    Returns (B, n_steps) trajectory [x_1, ..., x_n].
    """
    if time_tensor.ndim != 1:
        raise ValueError(f"Expected time_tensor to be 1D, got {time_tensor.shape}")
    B, S, _ = current_profile.shape
    n_steps = int(ts.shape[0]) - 1
    # Lane-dense slab: pad width to a multiple of 128 so writeback is unmasked.
    n_cols = max(128, ((n_steps + 127) // 128) * 128)

    ts = ts.astype(jnp.float32)
    tt = time_tensor.astype(jnp.float32)
    cur = jnp.reshape(current_profile.astype(jnp.float32), (B, S))
    x0 = x0.astype(jnp.float32)
    flat = _flat_params(params)

    # Precompute the time-index lookup once in XLA (depends only on ts/tt):
    # idx[s] = argmin |time_tensor - ts[s]| (first-index tie-break, like torch).
    idx = jnp.argmin(jnp.abs(ts[:-1, None] - tt[None, :]), axis=-1).astype(jnp.int32)

    smem = pl.BlockSpec(memory_space=pltpu.MemorySpace.SMEM)
    vmem = pl.BlockSpec(memory_space=pltpu.MemorySpace.VMEM)
    in_specs = [smem, smem, vmem, vmem] + [vmem] * len(flat)

    kernel = functools.partial(_odefunc_euler_kernel,
                               n_steps=n_steps, unroll=unroll)

    traj = pl.pallas_call(
        kernel,
        out_shape=jax.ShapeDtypeStruct((B, n_cols), jnp.float32),
        in_specs=in_specs,
        out_specs=vmem,
    )(ts, idx, cur, x0, *flat)

    return traj[:, :n_steps] if n_cols != n_steps else traj


# ----------------------------------------------------------------------------
# Deterministic parameter init (mirrors nn.Linear fan-in uniform init scales)
# ----------------------------------------------------------------------------
def init_params(key):
    dims = [(3, 128), (128, 128), (128, 64), (64, 1)]
    params = {}
    for i, (fan_in, fan_out) in enumerate(dims, start=1):
        key, kw, kb = jax.random.split(key, 3)
        bound = 1.0 / jnp.sqrt(float(fan_in))
        params[f"w{i}"] = jax.random.uniform(
            kw, (fan_in, fan_out), jnp.float32, -bound, bound)
        params[f"b{i}"] = jax.random.uniform(
            kb, (1, fan_out), jnp.float32, -bound, bound)
    return params


# ----------------------------------------------------------------------------
# Pure-JAX references for correctness checks
# ----------------------------------------------------------------------------
def odefunc_forward_ref(t, x, current_profile, time_tensor, params):
    B = current_profile.shape[0]
    time_idx = jnp.argmin(jnp.abs(time_tensor - t))
    current_at_t = current_profile[:, time_idx, :]
    t_col = jnp.full((B, 1), t, dtype=jnp.float32)
    inp = jnp.concatenate([x, current_at_t, t_col], axis=-1)      # (B, 3)
    h = jnp.maximum(inp @ params["w1"] + params["b1"], 0.0)
    h = jnp.maximum(h @ params["w2"] + params["b2"], 0.0)
    h = jnp.maximum(h @ params["w3"] + params["b3"], 0.0)
    return h @ params["w4"] + params["b4"]


def euler_rollout_ref(ts, x0, current_profile, time_tensor, params):
    n = ts.shape[0] - 1

    def step(x, i):
        dx = odefunc_forward_ref(ts[i], x, current_profile, time_tensor, params)
        x_new = x + (ts[i + 1] - ts[i]) * dx
        return x_new, x_new

    _, traj = jax.lax.scan(step, x0, jnp.arange(n))               # (n, B, 1)
    return jnp.transpose(traj[:, :, 0])                           # (B, n)


if __name__ == "__main__":
    key = jax.random.PRNGKey(0)
    k_params, k_x, k_cur = jax.random.split(key, 3)

    B, S = 8, 8          # batch, current-profile sequence length
    N_STEPS = 128        # fused solver steps (lane-dense, multiple of 128)

    params = init_params(k_params)
    x = jax.random.normal(k_x, (B, 1), jnp.float32)
    current_profile = jax.random.normal(k_cur, (B, S, 1), jnp.float32)
    time_tensor = jnp.linspace(0.0, 1.0, S, dtype=jnp.float32)

    # --- (1) single forward evaluation: exact ODEFunc.forward semantics ------
    t = jnp.float32(0.37)
    out = jax.block_until_ready(
        odefunc_forward(t, x, current_profile, time_tensor, params))
    ref = odefunc_forward_ref(t, x, current_profile, time_tensor, params)
    assert out.shape == (B, 1)
    assert jnp.allclose(out, ref, atol=1e-5, rtol=1e-5), (out, ref)

    # --- (2) fused Euler rollout: whole solver loop in one un-gridded call ---
    ts = jnp.linspace(0.0, 1.0, N_STEPS + 1, dtype=jnp.float32)
    traj = jax.block_until_ready(
        odefunc_integrate_euler(ts, x, current_profile, time_tensor, params))
    traj_ref = jax.block_until_ready(
        euler_rollout_ref(ts, x, current_profile, time_tensor, params))
    assert traj.shape == (B, N_STEPS)
    assert jnp.allclose(traj, traj_ref, atol=1e-3, rtol=1e-3), (
        jnp.max(jnp.abs(traj - traj_ref)))

    print("KERNEL_OK")
</pallas_src>

<mosaic_0001>
module attributes {stable_mosaic.version = 11 : i64} {
  func.func @_odefunc_forward_kernel(%arg0: memref<1x1xf32, #tpu.memory_space<smem>>, %arg1: memref<1x8xf32, #tpu.memory_space<vmem>>, %arg2: memref<8x8xf32, #tpu.memory_space<vmem>>, %arg3: memref<8x1xf32, #tpu.memory_space<vmem>>, %arg4: memref<3x128xf32, #tpu.memory_space<vmem>>, %arg5: memref<1x128xf32, #tpu.memory_space<vmem>>, %arg6: memref<128x128xf32, #tpu.memory_space<vmem>>, %arg7: memref<1x128xf32, #tpu.memory_space<vmem>>, %arg8: memref<128x64xf32, #tpu.memory_space<vmem>>, %arg9: memref<1x64xf32, #tpu.memory_space<vmem>>, %arg10: memref<1x64xf32, #tpu.memory_space<vmem>>, %arg11: memref<1x1xf32, #tpu.memory_space<vmem>>, %arg12: memref<8x1xf32, #tpu.memory_space<vmem>>) attributes {dimension_semantics = [], scalar_prefetch = 0 : i64, scratch_operands = 0 : i64, tpu.core_type = #tpu.core_type<tc>} {
    %c0 = arith.constant 0 : index
    %c0_0 = arith.constant 0 : index
    %0 = memref.load %arg0[%c0, %c0_0] : memref<1x1xf32, #tpu.memory_space<smem>>
    %c0_1 = arith.constant 0 : index
    %c0_2 = arith.constant 0 : index
    %1 = vector.load %arg3[%c0_1, %c0_2] : memref<8x1xf32, #tpu.memory_space<vmem>>, vector<8x1xf32>
    %c0_3 = arith.constant 0 : index
    %c0_4 = arith.constant 0 : index
    %2 = vector.load %arg1[%c0_3, %c0_4] : memref<1x8xf32, #tpu.memory_space<vmem>>, vector<1x8xf32>
    %c0_5 = arith.constant 0 : index
    %c0_6 = arith.constant 0 : index
    %3 = vector.load %arg2[%c0_5, %c0_6] : memref<8x8xf32, #tpu.memory_space<vmem>>, vector<8x8xf32>
    %c0_7 = arith.constant 0 : index
    %c0_8 = arith.constant 0 : index
    %4 = vector.load %arg4[%c0_7, %c0_8] : memref<3x128xf32, #tpu.memory_space<vmem>>, vector<3x128xf32>
    %c0_9 = arith.constant 0 : index
    %c0_10 = arith.constant 0 : index
    %5 = vector.load %arg5[%c0_9, %c0_10] : memref<1x128xf32, #tpu.memory_space<vmem>>, vector<1x128xf32>
    %c0_11 = arith.constant 0 : index
    %c0_12 = arith.constant 0 : index
    %6 = vector.load %arg6[%c0_11, %c0_12] : memref<128x128xf32, #tpu.memory_space<vmem>>, vector<128x128xf32>
    %c0_13 = arith.constant 0 : index
    %c0_14 = arith.constant 0 : index
    %7 = vector.load %arg7[%c0_13, %c0_14] : memref<1x128xf32, #tpu.memory_space<vmem>>, vector<1x128xf32>
    %c0_15 = arith.constant 0 : index
    %c0_16 = arith.constant 0 : index
    %8 = vector.load %arg8[%c0_15, %c0_16] : memref<128x64xf32, #tpu.memory_space<vmem>>, vector<128x64xf32>
    %c0_17 = arith.constant 0 : index
    %c0_18 = arith.constant 0 : index
    %9 = vector.load %arg9[%c0_17, %c0_18] : memref<1x64xf32, #tpu.memory_space<vmem>>, vector<1x64xf32>
    %c0_19 = arith.constant 0 : index
    %c0_20 = arith.constant 0 : index
    %10 = vector.load %arg10[%c0_19, %c0_20] : memref<1x64xf32, #tpu.memory_space<vmem>>, vector<1x64xf32>
    %c0_21 = arith.constant 0 : index
    %c0_22 = arith.constant 0 : index
    %11 = vector.load %arg11[%c0_21, %c0_22] : memref<1x1xf32, #tpu.memory_space<vmem>>, vector<1x1xf32>
    %12 = vector.broadcast %0 : f32 to vector<1x8xf32>
    %13 = arith.subf %2, %12 : vector<1x8xf32>
    %14 = math.absf %13 : vector<1x8xf32>
    %cst = arith.constant dense<0x7F800000> : vector<1xf32>
    %15 = vector.multi_reduction <minimumf>, %14, %cst [1] : vector<1x8xf32> to vector<1xf32>
    %16 = vector.shape_cast %15 : vector<1xf32> to vector<1x1xf32>
    %17 = tpu.iota {dimensions = array<i32: 1>} : vector<1x8xi32>
    %18 = vector.broadcast %16 : vector<1x1xf32> to vector<1x8xf32>
    %19 = arith.cmpf oeq, %14, %18 : vector<1x8xf32>
    %c8_i32 = arith.constant 8 : i32
    %20 = vector.broadcast %c8_i32 : i32 to vector<1x8xi32>
    %21 = arith.select %19, %17, %20 : vector<1x8xi1>, vector<1x8xi32>
    %cst_23 = arith.constant dense<2147483647> : vector<1xi32>
    %22 = vector.multi_reduction <minsi>, %21, %cst_23 [1] : vector<1x8xi32> to vector<1xi32>
    %23 = vector.shape_cast %22 : vector<1xi32> to vector<1x1xi32>
    %24 = tpu.iota {dimensions = array<i32: 1>} : vector<8x8xi32>
    %25 = vector.broadcast %23 : vector<1x1xi32> to vector<8x8xi32>
    %26 = arith.cmpi eq, %24, %25 : vector<8x8xi32>
    %cst_24 = arith.constant 0.000000e+00 : f32
    %27 = vector.broadcast %cst_24 : f32 to vector<8x8xf32>
    %28 = arith.select %26, %3, %27 : vector<8x8xi1>, vector<8x8xf32>
    %cst_25 = arith.constant dense<0.000000e+00> : vector<8xf32>
    %29 = vector.multi_reduction <add>, %28, %cst_25 [1] : vector<8x8xf32> to vector<8xf32>
    %30 = vector.shape_cast %29 : vector<8xf32> to vector<8x1xf32>
    %31 = vector.extract_strided_slice %4 {offsets = [0, 0], sizes = [1, 128], strides = [1, 1]} : vector<3x128xf32> to vector<1x128xf32>
    %32 = vector.broadcast %1 : vector<8x1xf32> to vector<8x128xf32>
    %33 = vector.broadcast %31 : vector<1x128xf32> to vector<8x128xf32>
    %34 = arith.mulf %32, %33 : vector<8x128xf32>
    %35 = vector.extract_strided_slice %4 {offsets = [1, 0], sizes = [1, 128], strides = [1, 1]} : vector<3x128xf32> to vector<1x128xf32>
    %36 = vector.broadcast %30 : vector<8x1xf32> to vector<8x128xf32>
    %37 = vector.broadcast %35 : vector<1x128xf32> to vector<8x128xf32>
    %38 = arith.mulf %36, %37 : vector<8x128xf32>
    %39 = arith.addf %34, %38 : vector<8x128xf32>
    %40 = vector.extract_strided_slice %4 {offsets = [2, 0], sizes = [1, 128], strides = [1, 1]} : vector<3x128xf32> to vector<1x128xf32>
    %41 = vector.broadcast %0 : f32 to vector<1x128xf32>
    %42 = arith.mulf %41, %40 : vector<1x128xf32>
    %43 = vector.broadcast %42 : vector<1x128xf32> to vector<8x128xf32>
    %44 = arith.addf %39, %43 : vector<8x128xf32>
    %45 = vector.broadcast %5 : vector<1x128xf32> to vector<8x128xf32>
    %46 = arith.addf %44, %45 : vector<8x128xf32>
    %cst_26 = arith.constant 0.000000e+00 : f32
    %47 = vector.broadcast %cst_26 : f32 to vector<8x128xf32>
    %48 = arith.maximumf %46, %47 : vector<8x128xf32>
    %cst_27 = arith.constant dense<0.000000e+00> : vector<8x128xf32>
    %49 = tpu.matmul %48, %6, %cst_27 {dimension_numbers = #tpu.dot_dimension_numbers<[1], [0], [0], [1], [0, 0, 1, 1], [], []>} : vector<8x128xf32>, vector<128x128xf32>, vector<8x128xf32> -> vector<8x128xf32>
    %50 = vector.broadcast %7 : vector<1x128xf32> to vector<8x128xf32>
    %51 = arith.addf %49, %50 : vector<8x128xf32>
    %cst_28 = arith.constant 0.000000e+00 : f32
    %52 = vector.broadcast %cst_28 : f32 to vector<8x128xf32>
    %53 = arith.maximumf %51, %52 : vector<8x128xf32>
    %cst_29 = arith.constant dense<0.000000e+00> : vector<8x64xf32>
    %54 = tpu.matmul %53, %8, %cst_29 {dimension_numbers = #tpu.dot_dimension_numbers<[1], [0], [0], [1], [0, 0, 1, 1], [], []>} : vector<8x128xf32>, vector<128x64xf32>, vector<8x64xf32> -> vector<8x64xf32>
    %55 = vector.broadcast %9 : vector<1x64xf32> to vector<8x64xf32>
    %56 = arith.addf %54, %55 : vector<8x64xf32>
    %cst_30 = arith.constant 0.000000e+00 : f32
    %57 = vector.broadcast %cst_30 : f32 to vector<8x64xf32>
    %58 = arith.maximumf %56, %57 : vector<8x64xf32>
    %59 = vector.broadcast %10 : vector<1x64xf32> to vector<8x64xf32>
    %60 = arith.mulf %58, %59 : vector<8x64xf32>
    %cst_31 = arith.constant dense<0.000000e+00> : vector<8xf32>
    %61 = vector.multi_reduction <add>, %60, %cst_31 [1] : vector<8x64xf32> to vector<8xf32>
    %62 = vector.shape_cast %61 : vector<8xf32> to vector<8x1xf32>
    %63 = vector.broadcast %11 : vector<1x1xf32> to vector<8x1xf32>
    %64 = arith.addf %62, %63 : vector<8x1xf32>
    %c0_32 = arith.constant 0 : index
    %c0_33 = arith.constant 0 : index
    %65 = vector.load %arg12[%c0_32, %c0_33] : memref<8x1xf32, #tpu.memory_space<vmem>>, vector<8x1xf32>
    tpu.vector_store %arg12[%c0_32, %c0_33], %64 {strides = array<i32>} : memref<8x1xf32, #tpu.memory_space<vmem>>, vector<8x1xf32>,
    return
  }
}

</mosaic_0001>

<bundles_post_ra>
// kernel: tpu_custom_call.1
= control target key start
LH: loop header
LB: loop body
LE: loop exit
PB: predicated region body
PF: predicated region fallthrough
CT: control target
= control target key end

     0   :  { %vm89_vm0 = vcmask 57344   ;;  %v93_v5 = vlaneseq  ;;  %v492_v19 = vmov 0   ;;  %v493_v21 = vmov 0.0|0.0   ;;  %s723_s0 = inlined_call_operand.<no memory space> [shape: f32[1,1], index: 0, kind: input, shape index: {}]   ;;  %s724_s1 = inlined_call_operand.vmem [shape: f32[1,8], index: 1, kind: input, shape index: {}]   ;;  %s725_s4 = inlined_call_operand.vmem [shape: f32[3,128], index: 4, kind: input, shape index: {}]   ;;  %s726_s3 = inlined_call_operand.vmem [shape: f32[8,1], index: 3, kind: input, shape index: {}]   ;;  %s727_s6 = inlined_call_operand.vmem [shape: f32[128,128], index: 6, kind: input, shape index: {}]   ;;  %s728_s2 = inlined_call_operand.vmem [shape: f32[8,8], index: 2, kind: input, shape index: {}]   ;;  %s729_s8 = inlined_call_operand.vmem [shape: f32[128,64], index: 8, kind: input, shape index: {}]   ;;  %s730_s5 = inlined_call_operand.vmem [shape: f32[1,128], index: 5, kind: input, shape index: {}]   ;;  %s731_s7 = inlined_call_operand.vmem [shape: f32[1,128], index: 7, kind: input, shape index: {}]   ;;  %s732_s11 = inlined_call_operand.<no memory space> [shape: f32[1,1], index: 11, kind: input, shape index: {}]   ;;  %s733_s9 = inlined_call_operand.vmem [shape: f32[1,64], index: 9, kind: input, shape index: {}]   ;;  %s734_s10 = inlined_call_operand.vmem [shape: f32[1,64], index: 10, kind: input, shape index: {}]   ;;  %s735_s12 = inlined_call_operand.vmem [shape: f32[8,1], index: 12, kind: output, shape index: {}]  }
   0x1   :  { %v46_v0 = vld [vmem:[%s724_s1] sm:$0x1]  ;;  %v86_v1 = vstv %s723_s0  ;;  %491 = vset.pattern.permute.xlu0 %v492_v19  ;;  %439 = vmatprep.subr.bf16.mxu0 %v493_v21  ;;  %v51_v23 = vld [vmem:[%s727_s6 + $0x8] sm:$0xff]  ;;  %v52_v25 = vld [vmem:[%s727_s6 + $0x10] sm:$0xff]  ;;  %vm118_vm3 = vcmask 64512   ;;  %vm494_vm5 = vmmov 0  }
   0x2   :  { %v87_v2 = vsub.f32 %v46_v0, %v86_v1  ;;  %v567_v6 = vand.u32 127, %v93_v5  ;;  %v573_v16 = vld [vmem:[%s725_s4] sm:$0x7]  ;;  %v576_v18 = vshrl.u32 %v93_v5, 7  ;;  %v53_v26 = vld [vmem:[%s727_s6 + $0x18] sm:$0xff]  ;;  %463 = vmatprep.subr.bf16.mxu1 %v493_v21  ;;  %v55_v31 = vld [vmem:[%s727_s6 + $0x28] sm:$0xff] }
   0x3   :  { %v138_v17 = vmul.f32 %v86_v1, %v573_v16  ;;  %v45_v20 = vld [vmem:[%s726_s3] sm:$0xff]  ;;  %v443_v28 = vpack.c.bf16 %v53_v26, %v52_v25  ;;  %v56_v33 = vld [vmem:[%s727_s6 + $0x30] sm:$0xff]  ;;  %v57_v34 = vld [vmem:[%s727_s6 + $0x38] sm:$0xff]  ;;  %v495_v58 = vmov 0.0   ;;  %vm313_vm6 = vcmask 523264  }
   0x4   :  { %v88_v3 = vand.u32 2147483647, %v87_v2  ;;  %v50_v22 = vld [vmem:[%s727_s6] sm:$0xff]  ;;  %v141_v27 = vsub.s32 2, %v576_v18  ;;  %v449_v35 = vpack.c.bf16 %v57_v34, %v56_v33  ;;  %v59_v37 = vld [vmem:[%s727_s6 + $0x48] sm:$0xff]  ;;  %v60_v39 = vld [vmem:[%s727_s6 + $0x50] sm:$0xff]  ;;  %401 = vmatprep.mubr.msk.f32.mxu0 %vm494_vm5, %v495_v58  ;;  %436 = vmatprep.mubr.msk.f32.mxu1 %vm494_vm5, %v495_v58 }
   0x5   :  { %v440_v24 = vpack.c.bf16 %v51_v23, %v50_v22  ;;  %v54_v30 = vld [vmem:[%s727_s6 + $0x20] sm:$0xff]  ;;  %v61_v40 = vld [vmem:[%s727_s6 + $0x58] sm:$0xff]  ;;  %v114_v46 = vsub.s32 0, %v576_v18  ;;  %v63_v53 = vld [vmem:[%s727_s6 + $0x68] sm:$0xff]  ;;  %vm324_vm7 = vcmask 7168  }
   0x6   :  { %v90_v4 = vsel %vm89_vm0, %v88_v3, inf  ;;  %v596_v29 = vrot.slane %v138_v17, %v141_v27  ;;  %v446_v32 = vpack.c.bf16 %v55_v31, %v54_v30  ;;  %v58_v36 = vld [vmem:[%s727_s6 + $0x40] sm:$0xff]  ;;  %v455_v41 = vpack.c.bf16 %v61_v40, %v60_v39  ;;  %v64_v55 = vld [vmem:[%s727_s6 + $0x70] sm:$0xff]  ;;  %v65_v56 = vld [vmem:[%s727_s6 + $0x78] sm:$0xff] }
   0x7   :  { %91 = vmin.xlane.f32.xlu0 %v90_v4  ;;  %441 = vmatpush3.bf16.msra.mxu0 %v440_v24  ;;  %v452_v38 = vpack.c.bf16 %v59_v37, %v58_v36  ;;  %v47_v48 = vld [vmem:[%s728_s2] sm:$0xff]  ;;  %v461_v57 = vpack.c.bf16 %v65_v56, %v64_v55  ;;  %v68_v60 = vld [vmem:[%s729_s8 + $0x8] sm:$0xff]  ;;  %v69_v61 = vld [vmem:[%s729_s8 + $0x10] sm:$0xff]  ;;  %v134_v17 = vsub.s32 1, %v576_v18  ;;  %v130_v19 = vrot.slane %v573_v16, %v114_v46 }
   0x8   :  { %442 = vmatprep.subr.bf16.mxu0 %v493_v21  ;;  %v62_v52 = vld [vmem:[%s727_s6 + $0x60] sm:$0xff]  ;;  %v70_v63 = vld [vmem:[%s729_s8 + $0x18] sm:$0xff]  ;;  %v72_v2 = vld [vmem:[%s729_s8 + $0x28] sm:$0xff]  ;;  %v18_v36 = vstv %s732_s11 }
   0x9   :  { %v458_v54 = vpack.c.bf16 %v63_v53, %v62_v52  ;;  %v67_v59 = vld [vmem:[%s729_s8] sm:$0xff]  ;;  %v467_v0 = vpack.c.bf16 %v70_v63, %v69_v61  ;;  %v73_v4 = vld [vmem:[%s729_s8 + $0x30] sm:$0xff]  ;;  %v74_v5 = vld [vmem:[%s729_s8 + $0x38] sm:$0xff]  ;;  %v135_v22 = vrot.slane %v573_v16, %v134_v17  ;;  %19 = vst [vmem:[#allocation3] sm:$0x1] %v18_v36 }
   0xa   :  { %v464_v62 = vpack.c.bf16 %v68_v60, %v67_v59  ;;  %v71_v1 = vld [vmem:[%s729_s8 + $0x20] sm:$0xff]  ;;  %v81_v18 = vld [vmem:[%s729_s8 + $0x70] sm:$0xff]  ;;  %v82_v16 = vld [vmem:[%s729_s8 + $0x78] sm:$0xff] }
   0xb   :  { %444 = vmatpush3.bf16.msra.mxu0 %v443_v28  ;;  %v330_v27 = vld [vmem:[%s730_s5] ss:$0 sm:$0xff] }
   0xc   :  { %445 = vmatprep.subr.bf16.mxu0 %v493_v21  ;;  %465 = vmatpush3.bf16.msra.mxu1 %v464_v62  ;;  %v332_v37 = vld [vmem:[%s733_s9] ss:$0 sm:$0xff] }
   0xd   :  { %466 = vmatprep.subr.bf16.mxu1 %v493_v21 }
   0xf   :  { %447 = vmatpush3.bf16.msra.mxu0 %v446_v32  ;;  %v331_v32 = vld [vmem:[%s731_s7] ss:$0 sm:$0xff] }
  0x10   :  { %448 = vmatprep.subr.bf16.mxu0 %v493_v21  ;;  %468 = vmatpush3.bf16.msra.mxu1 %v467_v0 }
  0x11   :  { %469 = vmatprep.subr.bf16.mxu1 %v493_v21 }
  0x13   :  { %450 = vmatpush3.bf16.msra.mxu0 %v449_v35 }
  0x14   :  { %451 = vmatprep.subr.bf16.mxu0 %v493_v21 }
  0x17   :  { %453 = vmatpush3.bf16.msra.mxu0 %v452_v38 }
  0x18   :  { %454 = vmatprep.subr.bf16.mxu0 %v493_v21 }
  0x1b   :  { %456 = vmatpush3.bf16.msra.mxu0 %v455_v41  ;;  %v333_v41 = vld [vmem:[%s734_s10] ss:$0 sm:$0xff] }
  0x1c   :  { %457 = vmatprep.subr.bf16.mxu0 %v493_v21 }
  0x1f   :  { %459 = vmatpush3.bf16.msra.mxu0 %v458_v54 }
  0x20   :  { %460 = vmatprep.subr.bf16.mxu0 %v493_v21 }
  0x23   :  { %462 = vmatpush3.bf16.msra.mxu0 %v461_v57 }
  0x94   :  { %v92_v7 = vpop.xlane.xlu0 %91 }
  0x95   :  { %vm95_vm1 = vcmp.eq.f32.partialorder %v88_v3, %v92_v7  ;;  %v470_v3 = vpack.c.bf16 %v72_v2, %v71_v1  ;;  %v75_v7 = vld [vmem:[%s729_s8 + $0x40] sm:$0xff] }
  0x96   :  { %v96_v8 = vsel %vm95_vm1, %v567_v6, 8 }
  0x97   :  { %v97_v9 = vsel %vm89_vm0, %v96_v8, 2147483647  ;;  %471 = vmatpush3.bf16.msra.mxu1 %v470_v3  ;;  %v76_v8 = vld [vmem:[%s729_s8 + $0x48] sm:$0xff] }
  0x98   :  { %v99_v10 = vshra.s32 %v97_v9, 16  ;;  %v98_v12 = vand.u32 65535, %v97_v9  ;;  %472 = vmatprep.subr.bf16.mxu1 %v493_v21  ;;  %v476_v9 = vpack.c.bf16 %v76_v8, %v75_v7 }
  0x9a   :  { %v101_v11 = vcvt.s32.f32 %v99_v10  ;;  %v100_v14 = vcvt.s32.f32 %v98_v12  ;;  %v77_v10 = vld [vmem:[%s729_s8 + $0x50] sm:$0xff] }
  0x9c   :  { %102 = vmin.xlane.f32.xlu0 %v101_v11 }
  0xb2   :  { %124 = vperm.xlu0 %491, %v45_v20  }
 0x129   :  { %v103_v13 = vpop.xlane.xlu0 %102 }
 0x12a   :  { %vm104_vm2 = vcmp.eq.f32.partialorder %v101_v11, %v103_v13  ;;  %v109_v42 = vcvt.f32.s32 %v103_v13  ;;  %v78_v11 = vld [vmem:[%s729_s8 + $0x58] sm:$0xff]  ;;  %v79_v13 = vld [vmem:[%s729_s8 + $0x60] sm:$0xff] }
 0x12b   :  { %v105_v15 = vsel %vm104_vm2, %v100_v14, inf  ;;  %v479_v12 = vpack.c.bf16 %v78_v11, %v77_v10  ;;  %v80_v14 = vld [vmem:[%s729_s8 + $0x68] sm:$0xff] }
 0x12c   :  { %106 = vmin.xlane.f32.xlu1 %v105_v15  ;;  %v110_v44 = vshll.u32 %v109_v42, 16  ;;  %v482_v15 = vpack.c.bf16 %v80_v14, %v79_v13 }
 0x131   :  { %v125_v20 = vpop.permute.xlu0 %124 }
 0x132   :  { %v131_v23 = vmul.f32 %v130_v19, %v125_v20 }
 0x1b9   :  { %v107_v43 = vpop.xlane.xlu1 %106 }
 0x1ba   :  { %v108_v45 = vcvt.f32.s32 %v107_v43 }
 0x1bc   :  { %v111_v47 = vadd.s32 %v110_v44, %v108_v45  ;;  %v334_v45 = vld [vmem:[#allocation3] ss:$0 sm:$0xff] }
 0x1be   :  { %v115_v49 = vrot.slane %v111_v47, %v114_v46 }
 0x1c0   :  { %vm116_vm4 = vcmp.eq.s32.totalorder %v567_v6, %v115_v49  ;;  %v473_v6 = vpack.c.bf16 %v74_v5, %v73_v4 }
 0x1c1   :  { %v117_v50 = vsel %vm116_vm4, %v47_v48, 0.0 }
 0x1c2   :  { %v119_v51 = vsel %vm118_vm3, %v117_v50, 0.0  ;;  %474 = vmatpush3.bf16.msra.mxu1 %v473_v6 }
 0x1c3   :  { %120 = vadd.xlane.f32.xlu1 %v119_v51  ;;  %475 = vmatprep.subr.bf16.mxu1 %v493_v21 }
 0x1c6   :  { %477 = vmatpush3.bf16.msra.mxu1 %v476_v9 }
 0x1c7   :  { %478 = vmatprep.subr.bf16.mxu1 %v493_v21 }
 0x1ca   :  { %480 = vmatpush3.bf16.msra.mxu1 %v479_v12 }
 0x1cb   :  { %481 = vmatprep.subr.bf16.mxu1 %v493_v21 }
 0x1ce   :  { %483 = vmatpush3.bf16.msra.mxu1 %v482_v15 }
 0x1cf   :  { %484 = vmatprep.subr.bf16.mxu1 %v493_v21  ;;  %v485_v21 = vpack.c.bf16 %v82_v16, %v81_v18 }
 0x1d2   :  { %486 = vmatpush3.bf16.msra.mxu1 %v485_v21 }
 0x250   :  { %v121_v24 = vpop.xlane.xlu1 %120 }
 0x251   :  { %v136_v25 = vmul.f32 %v135_v22, %v121_v24 }
 0x253   :  { %v137_v26 = vadd.f32 %v136_v25, %v131_v23 }
 0x255   :  { %v143_v28 = vadd.f32 %v596_v29, %v137_v26 }
 0x257   :  { %v150_v30 = vadd.f32 %v330_v27, %v143_v28 }
 0x259   :  { %v151_v31 = vmax.f32 %v150_v30, 0.0 }
 0x25b   :  { %402 = vmatmul.mubr.f32.vlgmr.msra.gmra.mrb[0].mxu0 %v151_v31 }
 0x32e   :  { %v224_v33 = vpop.f32.mrb[0].mxu0 }
 0x32f   :  { %v225_v34 = vadd.f32 %v331_v32, %v224_v33  ;;  %v403_v29 = vpop.f32.mrb[1].mxu0 }
 0x331   :  { %v228_v35 = vmax.f32 %v225_v34, 0.0 }
 0x333   :  { %437 = vmatmul.mubr.f32.vlgmr.msra.gmra.mrb[0].mxu1 %v228_v35 }
 0x406   :  { %v301_v38 = vpop.f32.mrb[0].mxu1 }
 0x407   :  { %v302_v39 = vadd.f32 %v332_v37, %v301_v38  ;;  %v438_v40 = vpop.f32.mrb[1].mxu1 }
 0x409   :  { %v305_v42 = vmax.f32 %v302_v39, 0.0 }
 0x40b   :  { %v312_v43 = vmul.f32 %v333_v41, %v305_v42 }
 0x40d   :  { %v314_v44 = vsel %vm313_vm6, %v312_v43, 0.0 }
 0x40e   :  { %315 = vadd.xlane.f32.xlu1 %v314_v44 }
 0x49b   :  { %v316_v46 = vpop.xlane.xlu1 %315 }
 0x49c   :  { %v323_v47 = vadd.f32 %v334_v45, %v316_v46 }
 0x49e   :  { %325 = vst.msk [vmem:[%s735_s12] sm:$0xff] %vm324_vm7, %v323_v47 }

</bundles_post_ra>
